<compile_context>
chip_gen: v5e
topology: v5e:2x2
jax: 0.10.0
libtpu: 0.0.40
codegen_flags: <defaults>
</compile_context>

<pallas_src>
import functools

import jax
import jax.numpy as jnp
from jax import lax
from jax.experimental import pallas as pl
from jax.experimental.pallas import tpu as pltpu

_OUT_SUBLANES = 8    # output slab kept (8, 128)-aligned -> unmasked lane-dense stores
_OUT_LANES = 128


def _smooth_nll_kernel(pred_ref, tgt_ref, out_ref, *, off_coef, on_coef,
                       n_rows, block_rows, need_mask):
    # pred_ref: (TN, C) in the input dtype        (VMEM, pipelined)
    # tgt_ref : (TN, 1) int32 class index per row (VMEM, pipelined)
    # out_ref : (1, 8, 128) f32 per-block partial (VMEM)
    pred = pred_ref[...]                              # native dtype (bf16 stays bf16)
    tgt = tgt_ref[...]                                # (TN, 1)
    tn, c = pred.shape

    # Lane iota emitted once per column (1, C); broadcast against (TN, 1) target.
    col = lax.broadcasted_iota(jnp.int32, (1, c), 1)
    pick = col == tgt                                 # (TN, C)
    # Single select to per-element coefficients (mean 1/N already folded in).
    coef = jnp.where(pick, jnp.float32(on_coef), jnp.float32(off_coef))

    def _partial(p):
        # One mul + one f32 accumulate chain for the whole block.
        return -jnp.sum(coef * p, dtype=jnp.float32)

    if need_mask:
        i = pl.program_id(0)
        last = pl.num_programs(0) - 1

        @pl.when(i != last)
        def _():
            out_ref[...] = jnp.full(out_ref.shape, _partial(pred), jnp.float32)

        @pl.when(i == last)
        def _():
            # Tail block only: (TN, 1) sublane validity mask; zero OOB rows of
            # pred (their data is undefined) before the fused reduction.
            row = lax.broadcasted_iota(jnp.int32, (tn, 1), 0) + i * block_rows
            valid = row < n_rows
            pred_m = jnp.where(valid, pred, jnp.zeros((), pred.dtype))
            out_ref[...] = jnp.full(out_ref.shape, _partial(pred_m), jnp.float32)
    else:
        out_ref[...] = jnp.full(out_ref.shape, _partial(pred), jnp.float32)


def _vmem_plan():
    """Per-generation (per-buffer budget, vmem_limit_bytes)."""
    cap = None
    try:
        cap = getattr(pltpu.get_tpu_info(), "vmem_capacity_bytes", None)
    except Exception:
        cap = None
    if cap is None:
        cap = 128 * 1024 * 1024
    if cap >= 96 * 1024 * 1024:
        # v5e / v6e: 128 MiB physical -> generous blocks, raised scoped limit.
        return 12 * 1024 * 1024, 64 * 1024 * 1024
    # v7x: 64 MiB physical per TensorCore -> tighter footprint cap.
    return 8 * 1024 * 1024, 40 * 1024 * 1024


def _pick_block_rows(n, c, itemsize, budget_bytes):
    """Row tile sized against VMEM (incl. lane-padded target) and megacore."""
    # Per pipelined buffer: pred row (c * itemsize) + lane-padded int32 target
    # row (128 * 4 bytes).
    bytes_per_row = c * itemsize + _OUT_LANES * 4
    rows = budget_bytes // max(1, bytes_per_row)
    rows = max(8, (rows // 8) * 8)                    # sublane-aligned
    # For non-tiny inputs, keep >= 4 blocks so megacore splitting and
    # DMA/compute overlap stay active.
    if n * bytes_per_row > 2 * 1024 * 1024:
        quarter = ((pl.cdiv(n, 4) + 7) // 8) * 8
        rows = min(rows, max(8, quarter))
    if rows >= n:
        return n                                      # full dim (always legal)
    return rows


def smooth_nll_loss(prediction, target, smoothing=0.0, block_rows=None):
    """Pallas equivalent of SmoothNLLLoss(smoothing).forward(prediction, target)."""
    n, c = prediction.shape
    assert c > 1, "SmoothNLLLoss requires at least 2 classes (off_val = smoothing/(C-1))."
    itemsize = jnp.dtype(prediction.dtype).itemsize

    budget_bytes, vmem_limit = _vmem_plan()
    if block_rows is None:
        block_rows = _pick_block_rows(n, c, itemsize, budget_bytes)
    else:
        # Guard: block_rows must be a multiple of 8 or equal to N.
        block_rows = int(block_rows)
        if block_rows >= n:
            block_rows = n
        elif block_rows % 8 != 0:
            block_rows = max(8, (block_rows // 8) * 8)

    grid = pl.cdiv(n, block_rows)
    need_mask = (n % block_rows) != 0

    # Fold smoothing weights and the 1/N mean into two trace-time scalars.
    off_coef = (float(smoothing) / (c - 1)) / n
    on_coef = (1.0 - float(smoothing)) / n

    tgt2d = target.astype(jnp.int32).reshape(n, 1)

    kernel = functools.partial(
        _smooth_nll_kernel, off_coef=off_coef, on_coef=on_coef,
        n_rows=n, block_rows=block_rows, need_mask=need_mask)

    cost = pl.CostEstimate(
        flops=3 * n * c,
        transcendentals=0,
        bytes_accessed=n * c * itemsize + n * 4
        + grid * _OUT_SUBLANES * _OUT_LANES * 4)

    partials = pl.pallas_call(
        kernel,
        out_shape=jax.ShapeDtypeStruct((grid, _OUT_SUBLANES, _OUT_LANES),
                                       jnp.float32),
        grid=(grid,),
        in_specs=[
            pl.BlockSpec((block_rows, c), lambda i: (i, 0)),
            pl.BlockSpec((block_rows, 1), lambda i: (i, 0)),
        ],
        out_specs=pl.BlockSpec((1, _OUT_SUBLANES, _OUT_LANES),
                               lambda i: (i, 0, 0)),
        compiler_params=pltpu.CompilerParams(
            dimension_semantics=("parallel",),
            vmem_limit_bytes=vmem_limit),
        cost_estimate=cost,
    )(prediction, tgt2d)

    # Tiny final reduction over per-block partials (mean already folded in).
    return jnp.sum(partials[:, 0, 0])


def _reference(prediction, target, smoothing):
    n, c = prediction.shape
    off_val = smoothing / (c - 1)
    pred_f32 = prediction.astype(jnp.float32)
    smooth_target = jnp.full((n, c), off_val, dtype=jnp.float32)
    smooth_target = smooth_target.at[jnp.arange(n), target].set(1.0 - smoothing)
    return jnp.mean(jnp.sum(-smooth_target * pred_f32, axis=-1))


if __name__ == "__main__":
    key = jax.random.PRNGKey(0)
    k1, k2, k3, k4, k5, k6 = jax.random.split(key, 6)
    smoothing = 0.1

    # Case 1: small shape consistent with the module (batch=8, n_class=32); grid=1.
    N, C = 8, 32
    logits = jax.random.normal(k1, (N, C), dtype=jnp.float32)
    prediction = jax.nn.log_softmax(logits, axis=-1)   # log-probs, like NLL input
    target = jax.random.randint(k2, (N,), 0, C, dtype=jnp.int32)
    loss = smooth_nll_loss(prediction, target, smoothing=smoothing)
    jax.block_until_ready(loss)
    ref = _reference(prediction, target, smoothing)
    assert jnp.allclose(loss, ref, atol=1e-5, rtol=1e-5), (loss, ref)

    # Case 2: multi-block grid + gated tail-masking path (20 % 8 != 0).
    N2, C2 = 20, 128
    logits2 = jax.random.normal(k3, (N2, C2), dtype=jnp.float32)
    pred2 = jax.nn.log_softmax(logits2, axis=-1)
    tgt2 = jax.random.randint(k4, (N2,), 0, C2, dtype=jnp.int32)
    loss2 = smooth_nll_loss(pred2, tgt2, smoothing=smoothing, block_rows=8)
    jax.block_until_ready(loss2)
    ref2 = _reference(pred2, tgt2, smoothing)
    assert jnp.allclose(loss2, ref2, atol=1e-5, rtol=1e-5), (loss2, ref2)

    # Case 3: bf16 input, automatic block sizing (multi-block, no tail mask).
    N3, C3 = 1024, 1024
    logits3 = jax.random.normal(k5, (N3, C3), dtype=jnp.bfloat16)
    pred3 = jax.nn.log_softmax(logits3, axis=-1)
    tgt3 = jax.random.randint(k6, (N3,), 0, C3, dtype=jnp.int32)
    loss3 = smooth_nll_loss(pred3, tgt3, smoothing=smoothing)
    jax.block_until_ready(loss3)
    ref3 = _reference(pred3, tgt3, smoothing)
    assert jnp.allclose(loss3, ref3, atol=1e-2, rtol=1e-2), (loss3, ref3)

    print("KERNEL_OK")
</pallas_src>

<mosaic_0001>
module attributes {stable_mosaic.version = 11 : i64} {
  func.func @_smooth_nll_kernel(%arg0: i32, %arg1: memref<8x32xf32, #tpu.memory_space<vmem>>, %arg2: memref<8x1xi32, #tpu.memory_space<vmem>>, %arg3: memref<1x8x128xf32, #tpu.memory_space<vmem>>) attributes {dimension_semantics = [#tpu.dimension_semantics<parallel>], iteration_bounds = array<i64: 1>, scalar_prefetch = 0 : i64, scratch_operands = 0 : i64, tpu.core_type = #tpu.core_type<tc>, window_params = [{transform_indices = @transform_0, window_bounds = array<i64: 8, 32>}, {transform_indices = @transform_1, window_bounds = array<i64: 8, 1>}, {transform_indices = @transform_2, window_bounds = array<i64: 1, 8, 128>}]} {
    %c0 = arith.constant 0 : index
    %c0_0 = arith.constant 0 : index
    %0 = vector.load %arg1[%c0, %c0_0] : memref<8x32xf32, #tpu.memory_space<vmem>>, vector<8x32xf32>
    %c0_1 = arith.constant 0 : index
    %c0_2 = arith.constant 0 : index
    %1 = vector.load %arg2[%c0_1, %c0_2] : memref<8x1xi32, #tpu.memory_space<vmem>>, vector<8x1xi32>
    %2 = tpu.iota {dimensions = array<i32: 1>} : vector<1x32xi32>
    %3 = vector.broadcast %2 : vector<1x32xi32> to vector<8x32xi32>
    %4 = vector.broadcast %1 : vector<8x1xi32> to vector<8x32xi32>
    %5 = arith.cmpi eq, %3, %4 : vector<8x32xi32>
    %cst = arith.constant 1.125000e-01 : f32
    %cst_3 = arith.constant 4.032258E-4 : f32
    %6 = vector.broadcast %cst : f32 to vector<8x32xf32>
    %7 = vector.broadcast %cst_3 : f32 to vector<8x32xf32>
    %8 = arith.select %5, %6, %7 : vector<8x32xi1>, vector<8x32xf32>
    %9 = arith.mulf %8, %0 : vector<8x32xf32>
    %10 = vector.shape_cast %9 : vector<8x32xf32> to vector<1x8x32xf32>
    %cst_4 = arith.constant dense<0.000000e+00> : vector<1xf32>
    %11 = vector.multi_reduction <add>, %10, %cst_4 [1, 2] : vector<1x8x32xf32> to vector<1xf32>
    %12 = vector.shape_cast %11 : vector<1xf32> to vector<1x1x1xf32>
    %13 = vector.extract %12[0, 0, 0] : f32 from vector<1x1x1xf32>
    %cst_5 = arith.constant 0.000000e+00 : f32
    %14 = arith.subf %cst_5, %13 : f32
    %15 = vector.broadcast %14 : f32 to vector<1x8x128xf32>
    %c0_6 = arith.constant 0 : index
    %c0_7 = arith.constant 0 : index
    %c0_8 = arith.constant 0 : index
    %16 = vector.load %arg3[%c0_6, %c0_7, %c0_8] : memref<1x8x128xf32, #tpu.memory_space<vmem>>, vector<1x8x128xf32>
    tpu.vector_store %arg3[%c0_6, %c0_7, %c0_8], %15 {strides = array<i32>} : memref<1x8x128xf32, #tpu.memory_space<vmem>>, vector<1x8x128xf32>,
    return
  }
  func.func @transform_0(%arg0: i32) -> (i32, i32) {
    %c0_i32 = arith.constant 0 : i32
    %c0_i32_0 = arith.constant 0 : i32
    return %arg0, %c0_i32 : i32, i32
  }
  func.func @transform_1(%arg0: i32) -> (i32, i32) {
    %c0_i32 = arith.constant 0 : i32
    %c0_i32_0 = arith.constant 0 : i32
    return %arg0, %c0_i32 : i32, i32
  }
  func.func @transform_2(%arg0: i32) -> (i32, i32, i32) {
    %c0_i32 = arith.constant 0 : i32
    %c0_i32_0 = arith.constant 0 : i32
    %c0_i32_1 = arith.constant 0 : i32
    return %arg0, %c0_i32, %c0_i32_0 : i32, i32, i32
  }
}

</mosaic_0001>

<bundles_post_ra>
// kernel: tpu_custom_call.1
= control target key start
LH: loop header
LB: loop body
LE: loop exit
PB: predicated region body
PF: predicated region fallthrough
CT: control target
= control target key end

     0   :  { %s111_s0 = inlined_call_operand.vmem [shape: f32[8,32], index: 0, kind: input, shape index: {}]   ;;  %s112_s1 = inlined_call_operand.vmem [shape: s32[8,1], index: 1, kind: input, shape index: {}]   ;;  %s113_s2 = inlined_call_operand.hbm [shape: f32[1,8,128], index: 2, kind: output, shape index: {}]  }
   0x1   :  { %v13_v0 = vld [vmem:[%s112_s1] sm:$0xff] }
   0x2   :  { %7 = vsyncpa [#allocation3], 0  ;;  %v84_v1 = vmov 0   ;;  %v14_v2 = vlaneseq  ;;  %v12_v5 = vld [vmem:[%s111_s0] sm:$0xff]  ;;  %v85_v6 = vmov 0.0004032258  }
   0x3   :  { %57 = vset.pattern.permute.xlu0 %v84_v1  ;;  %vm22_vm1 = vcmask 261120   ;;  %s86_s1 = smov [#allocation2]   ;;  %s43_s0 = sshll.u32 %s113_s2, 4  ;;  %s44_s0 = int_to_ptr.hbm [resolvable:$true] %s43_s0 }
   0x4   :  { %17 = vperm.xlu0 %57, %v13_v0   ;;  %v15_v3 = vand.u32 127, %v14_v2  ;;  %s41_s13 = sshll.u32 %s86_s1, 4  ;;  %s42_s13 = int_to_ptr.vmem [resolvable:$true] %s41_s13 }
  0x76   :  { %v18_v4 = vpop.permute.xlu0 %17 }
  0x77   :  { %vm19_vm0 = vcmp.eq.s32.totalorder %v15_v3, %v18_v4 }
  0x78   :  { %v20_v7 = vsel %vm19_vm0, 0.1125, %v85_v6 }
  0x79   :  { %v21_v8 = vmul.f32 %v20_v7, %v12_v5 }
  0x7b   :  { %v23_v9 = vsel %vm22_vm1, %v21_v8, 0.0 }
  0x7c   :  { %24 = vadd.xlane.f32.xlu0 %v23_v9 }
  0xef   :  { %v25_v10 = vpop.xlane.xlu0 %24 }
  0xf0   :  { %v26_v11 = vrot.slane %v25_v10, 4 }
  0xf2   :  { %v27_v12 = vadd.f32 %v26_v11, %v25_v10 }
  0xf4   :  { %v28_v13 = vrot.slane %v27_v12, 2 }
  0xf6   :  { %v29_v14 = vadd.f32 %v28_v13, %v27_v12 }
  0xf8   :  { %v30_v15 = vrot.slane %v29_v14, 1 }
  0xfa   :  { %v31_v16 = vadd.f32 %v30_v15, %v29_v14 }
  0xfc   :  { %52 = vpush %v31_v16 }
 0x12d   :  { %s53_s16 = spop %52 }
 0x12e   :  { %s33_s17 = ssub.f32 0.0, %s53_s16 }
 0x130   :  { %v34_v17 = vstv %s33_s17 }
 0x131   :  { %35 = vst [vmem:[#allocation2] sm:$0xff] %v34_v17 }
 0x132   :  { %46 = dma.vmem_to_hbm [thread:$0]  %s42_s13, 128, %s44_s0, [#allocation3]  }
 0x133   :  { %82 = dma.done.wait [#allocation3], 128  }
 0x134   :  { %83 = vsyncadd [#allocation3], 4294967168 }
 0x135   :  { %51 = vsyncpa [#allocation3], 1 }

</bundles_post_ra>
